<compile_context>
chip_gen: v7x
topology: tpu7x:2x2x1
jax: 0.10.0
libtpu: 0.0.40
codegen_flags: <defaults>
</compile_context>

<pallas_src>
import jax
import jax.numpy as jnp
import numpy as np
from jax.experimental import pallas as pl
from jax.experimental.pallas import tpu as pltpu

NUM_LAYERS = 6   # six Linear layers, each followed by ReLU
D = 10           # feature dim (Linear(10, 10))


def circular_kernel(x_ref, w_ref, b_ref, acts_ref):
    """One batch tile, all 6 Linear+ReLU layers, batch on lanes.

    x_ref    : (D, TB)       input tile, features on sublanes, batch on lanes
    w_ref    : (L, D, D)     PyTorch-convention weights W (out, in) -- VMEM resident
    b_ref    : (L, D, 1)     biases (broadcast over lanes)          -- VMEM resident
    acts_ref : (L, D, TB)    post-ReLU activation of every layer (lane-dense stores)
    """
    h = x_ref[...]                                   # (D, TB) f32
    w_all = w_ref[...]                               # hoisted: loaded once, not per layer
    b_all = b_ref[...]
    for l in range(NUM_LAYERS):                      # fully unrolled tiny-matmul chain
        # PyTorch Linear y = x @ W.T + b  ==  W @ h + b in column (batch-on-lanes) layout,
        # so the PyTorch (out, in) weight needs no transpose at all.
        y = jnp.dot(w_all[l], h, preferred_element_type=jnp.float32) + b_all[l]
        h = jnp.maximum(y, 0.0)                      # ReLU (VPU)
        acts_ref[l] = h


@jax.jit
def _forward(x, weights, biases):
    """x: (B, D) f32; weights: (L, D, D) PyTorch W(out,in); biases: (L, D).
    Returns (final, acts) with final (B, D) and acts (L, B, D), f32, on device."""
    B = x.shape[0]
    # Lane-dense batch tile: multiple of 128, big enough to amortize per-step grid
    # overhead, small enough that a double-buffered tile stays far below v7x's
    # 64 MiB VMEM (and v5e's 16 MiB scoped default).
    TB = 128 if B <= 128 else (256 if B <= 2048 else 512)
    Bp = ((B + TB - 1) // TB) * TB

    xt = jnp.pad(jnp.transpose(x), ((0, 0), (0, Bp - B)))   # (D, Bp): batch on lanes
    b = biases.reshape(NUM_LAYERS, D, 1)

    acts = pl.pallas_call(
        circular_kernel,
        out_shape=jax.ShapeDtypeStruct((NUM_LAYERS, D, Bp), jnp.float32),
        grid_spec=pltpu.PrefetchScalarGridSpec(
            num_scalar_prefetch=0,
            grid=(Bp // TB,),
            in_specs=[
                pl.BlockSpec((D, TB), lambda i: (0, i)),                  # batch-tiled input
                pl.BlockSpec((NUM_LAYERS, D, D), lambda i: (0, 0, 0)),    # resident weights
                pl.BlockSpec((NUM_LAYERS, D, 1), lambda i: (0, 0, 0)),    # resident biases
            ],
            out_specs=pl.BlockSpec((NUM_LAYERS, D, TB), lambda i: (0, 0, i)),
        ),
        compiler_params=pltpu.CompilerParams(
            dimension_semantics=("parallel",),    # shard batch tiles across TCs on v7x
        ),
    )(xt, weights, b)

    # Back to the module's (batch, feature) layout; padding lanes sliced away.
    acts = jnp.transpose(acts[:, :, :B], (0, 2, 1))          # (L, B, D)
    return acts[-1], acts


def circular_nn_forward(x, weights, biases):
    """Mirror of CircularNN.forward: returns (final_x, [numpy activation per ReLU])."""
    final, acts = _forward(x, weights, biases)
    acts_np = jax.device_get(acts)        # ONE device->host transfer for all 6 activations
    activations = [acts_np[l] for l in range(NUM_LAYERS)]
    return final, activations


def _reference(x, weights, biases):
    """Pure-JAX reference of the PyTorch forward."""
    h = x
    acts = []
    for l in range(NUM_LAYERS):
        h = jnp.maximum(h @ weights[l].T + biases[l], 0.0)
        acts.append(h)
    return h, acts


if __name__ == "__main__":
    key = jax.random.PRNGKey(0)
    k_x, k_w, k_b = jax.random.split(key, 3)

    B = 8  # small batch
    x = jax.random.normal(k_x, (B, D), dtype=jnp.float32)

    # Deterministic parameter init mimicking PyTorch Linear default U(-1/sqrt(in), 1/sqrt(in)).
    bound = 1.0 / np.sqrt(D)
    weights = jax.random.uniform(
        k_w, (NUM_LAYERS, D, D), minval=-bound, maxval=bound, dtype=jnp.float32
    )
    biases = jax.random.uniform(
        k_b, (NUM_LAYERS, D), minval=-bound, maxval=bound, dtype=jnp.float32
    )

    out, activations = circular_nn_forward(x, weights, biases)
    out = jax.block_until_ready(out)

    # Verify against pure-JAX reference.
    ref_out, ref_acts = _reference(x, weights, biases)
    np.testing.assert_allclose(np.asarray(out), np.asarray(ref_out), rtol=1e-5, atol=1e-5)
    assert len(activations) == NUM_LAYERS
    for a, r in zip(activations, ref_acts):
        np.testing.assert_allclose(a, np.asarray(r), rtol=1e-5, atol=1e-5)

    print("KERNEL_OK")
</pallas_src>

<mosaic_0001>
module attributes {stable_mosaic.version = 11 : i64} {
  func.func @circular_kernel(%arg0: i32, %arg1: memref<10x128xf32, #tpu.memory_space<vmem>>, %arg2: memref<6x10x10xf32, #tpu.memory_space<vmem>>, %arg3: memref<6x10x1xf32, #tpu.memory_space<vmem>>, %arg4: memref<6x10x128xf32, #tpu.memory_space<vmem>>) attributes {dimension_semantics = [#tpu.dimension_semantics<parallel>], iteration_bounds = array<i64: 1>, scalar_prefetch = 0 : i64, scratch_operands = 0 : i64, tpu.core_type = #tpu.core_type<tc>, window_params = [{transform_indices = @transform_0, window_bounds = array<i64: 10, 128>}, {pipeline_mode = #tpu.pipeline_mode<synchronous>, transform_indices = @transform_1, window_bounds = array<i64: 6, 10, 10>}, {pipeline_mode = #tpu.pipeline_mode<synchronous>, transform_indices = @transform_2, window_bounds = array<i64: 6, 10, 1>}, {transform_indices = @transform_3, window_bounds = array<i64: 6, 10, 128>}]} {
    %c0 = arith.constant 0 : index
    %c0_0 = arith.constant 0 : index
    %0 = vector.load %arg1[%c0, %c0_0] : memref<10x128xf32, #tpu.memory_space<vmem>>, vector<10x128xf32>
    %c0_1 = arith.constant 0 : index
    %c0_2 = arith.constant 0 : index
    %c0_3 = arith.constant 0 : index
    %1 = vector.load %arg2[%c0_1, %c0_2, %c0_3] : memref<6x10x10xf32, #tpu.memory_space<vmem>>, vector<6x10x10xf32>
    %c0_4 = arith.constant 0 : index
    %c0_5 = arith.constant 0 : index
    %c0_6 = arith.constant 0 : index
    %2 = vector.load %arg3[%c0_4, %c0_5, %c0_6] : memref<6x10x1xf32, #tpu.memory_space<vmem>>, vector<6x10x1xf32>
    %3 = vector.extract_strided_slice %1 {offsets = [0, 0, 0], sizes = [1, 10, 10], strides = [1, 1, 1]} : vector<6x10x10xf32> to vector<1x10x10xf32>
    %4 = vector.shape_cast %3 : vector<1x10x10xf32> to vector<10x10xf32>
    %cst = arith.constant dense<0.000000e+00> : vector<10x128xf32>
    %5 = tpu.matmul %4, %0, %cst {dimension_numbers = #tpu.dot_dimension_numbers<[1], [0], [0], [1], [0, 0, 1, 1], [], []>} : vector<10x10xf32>, vector<10x128xf32>, vector<10x128xf32> -> vector<10x128xf32>
    %6 = vector.extract_strided_slice %2 {offsets = [0, 0, 0], sizes = [1, 10, 1], strides = [1, 1, 1]} : vector<6x10x1xf32> to vector<1x10x1xf32>
    %7 = vector.shape_cast %6 : vector<1x10x1xf32> to vector<10x1xf32>
    %8 = vector.broadcast %7 : vector<10x1xf32> to vector<10x128xf32>
    %9 = arith.addf %5, %8 : vector<10x128xf32>
    %cst_7 = arith.constant 0.000000e+00 : f32
    %10 = vector.broadcast %cst_7 : f32 to vector<10x128xf32>
    %11 = arith.maximumf %9, %10 : vector<10x128xf32>
    %c0_8 = arith.constant 0 : index
    %c0_9 = arith.constant 0 : index
    %c0_10 = arith.constant 0 : index
    %12 = vector.load %arg4[%c0_8, %c0_9, %c0_10] : memref<6x10x128xf32, #tpu.memory_space<vmem>>, vector<1x10x128xf32>
    %13 = vector.shape_cast %12 : vector<1x10x128xf32> to vector<10x128xf32>
    %14 = vector.shape_cast %11 : vector<10x128xf32> to vector<1x10x128xf32>
    tpu.vector_store %arg4[%c0_8, %c0_9, %c0_10], %14 {strides = array<i32>} : memref<6x10x128xf32, #tpu.memory_space<vmem>>, vector<1x10x128xf32>,
    %15 = vector.extract_strided_slice %1 {offsets = [1, 0, 0], sizes = [1, 10, 10], strides = [1, 1, 1]} : vector<6x10x10xf32> to vector<1x10x10xf32>
    %16 = vector.shape_cast %15 : vector<1x10x10xf32> to vector<10x10xf32>
    %cst_11 = arith.constant dense<0.000000e+00> : vector<10x128xf32>
    %17 = tpu.matmul %16, %11, %cst_11 {dimension_numbers = #tpu.dot_dimension_numbers<[1], [0], [0], [1], [0, 0, 1, 1], [], []>} : vector<10x10xf32>, vector<10x128xf32>, vector<10x128xf32> -> vector<10x128xf32>
    %18 = vector.extract_strided_slice %2 {offsets = [1, 0, 0], sizes = [1, 10, 1], strides = [1, 1, 1]} : vector<6x10x1xf32> to vector<1x10x1xf32>
    %19 = vector.shape_cast %18 : vector<1x10x1xf32> to vector<10x1xf32>
    %20 = vector.broadcast %19 : vector<10x1xf32> to vector<10x128xf32>
    %21 = arith.addf %17, %20 : vector<10x128xf32>
    %cst_12 = arith.constant 0.000000e+00 : f32
    %22 = vector.broadcast %cst_12 : f32 to vector<10x128xf32>
    %23 = arith.maximumf %21, %22 : vector<10x128xf32>
    %c1 = arith.constant 1 : index
    %c0_13 = arith.constant 0 : index
    %c0_14 = arith.constant 0 : index
    %24 = vector.load %arg4[%c1, %c0_13, %c0_14] : memref<6x10x128xf32, #tpu.memory_space<vmem>>, vector<1x10x128xf32>
    %25 = vector.shape_cast %24 : vector<1x10x128xf32> to vector<10x128xf32>
    %26 = vector.shape_cast %23 : vector<10x128xf32> to vector<1x10x128xf32>
    tpu.vector_store %arg4[%c1, %c0_13, %c0_14], %26 {strides = array<i32>} : memref<6x10x128xf32, #tpu.memory_space<vmem>>, vector<1x10x128xf32>,
    %27 = vector.extract_strided_slice %1 {offsets = [2, 0, 0], sizes = [1, 10, 10], strides = [1, 1, 1]} : vector<6x10x10xf32> to vector<1x10x10xf32>
    %28 = vector.shape_cast %27 : vector<1x10x10xf32> to vector<10x10xf32>
    %cst_15 = arith.constant dense<0.000000e+00> : vector<10x128xf32>
    %29 = tpu.matmul %28, %23, %cst_15 {dimension_numbers = #tpu.dot_dimension_numbers<[1], [0], [0], [1], [0, 0, 1, 1], [], []>} : vector<10x10xf32>, vector<10x128xf32>, vector<10x128xf32> -> vector<10x128xf32>
    %30 = vector.extract_strided_slice %2 {offsets = [2, 0, 0], sizes = [1, 10, 1], strides = [1, 1, 1]} : vector<6x10x1xf32> to vector<1x10x1xf32>
    %31 = vector.shape_cast %30 : vector<1x10x1xf32> to vector<10x1xf32>
    %32 = vector.broadcast %31 : vector<10x1xf32> to vector<10x128xf32>
    %33 = arith.addf %29, %32 : vector<10x128xf32>
    %cst_16 = arith.constant 0.000000e+00 : f32
    %34 = vector.broadcast %cst_16 : f32 to vector<10x128xf32>
    %35 = arith.maximumf %33, %34 : vector<10x128xf32>
    %c2 = arith.constant 2 : index
    %c0_17 = arith.constant 0 : index
    %c0_18 = arith.constant 0 : index
    %36 = vector.load %arg4[%c2, %c0_17, %c0_18] : memref<6x10x128xf32, #tpu.memory_space<vmem>>, vector<1x10x128xf32>
    %37 = vector.shape_cast %36 : vector<1x10x128xf32> to vector<10x128xf32>
    %38 = vector.shape_cast %35 : vector<10x128xf32> to vector<1x10x128xf32>
    tpu.vector_store %arg4[%c2, %c0_17, %c0_18], %38 {strides = array<i32>} : memref<6x10x128xf32, #tpu.memory_space<vmem>>, vector<1x10x128xf32>,
    %39 = vector.extract_strided_slice %1 {offsets = [3, 0, 0], sizes = [1, 10, 10], strides = [1, 1, 1]} : vector<6x10x10xf32> to vector<1x10x10xf32>
    %40 = vector.shape_cast %39 : vector<1x10x10xf32> to vector<10x10xf32>
    %cst_19 = arith.constant dense<0.000000e+00> : vector<10x128xf32>
    %41 = tpu.matmul %40, %35, %cst_19 {dimension_numbers = #tpu.dot_dimension_numbers<[1], [0], [0], [1], [0, 0, 1, 1], [], []>} : vector<10x10xf32>, vector<10x128xf32>, vector<10x128xf32> -> vector<10x128xf32>
    %42 = vector.extract_strided_slice %2 {offsets = [3, 0, 0], sizes = [1, 10, 1], strides = [1, 1, 1]} : vector<6x10x1xf32> to vector<1x10x1xf32>
    %43 = vector.shape_cast %42 : vector<1x10x1xf32> to vector<10x1xf32>
    %44 = vector.broadcast %43 : vector<10x1xf32> to vector<10x128xf32>
    %45 = arith.addf %41, %44 : vector<10x128xf32>
    %cst_20 = arith.constant 0.000000e+00 : f32
    %46 = vector.broadcast %cst_20 : f32 to vector<10x128xf32>
    %47 = arith.maximumf %45, %46 : vector<10x128xf32>
    %c3 = arith.constant 3 : index
    %c0_21 = arith.constant 0 : index
    %c0_22 = arith.constant 0 : index
    %48 = vector.load %arg4[%c3, %c0_21, %c0_22] : memref<6x10x128xf32, #tpu.memory_space<vmem>>, vector<1x10x128xf32>
    %49 = vector.shape_cast %48 : vector<1x10x128xf32> to vector<10x128xf32>
    %50 = vector.shape_cast %47 : vector<10x128xf32> to vector<1x10x128xf32>
    tpu.vector_store %arg4[%c3, %c0_21, %c0_22], %50 {strides = array<i32>} : memref<6x10x128xf32, #tpu.memory_space<vmem>>, vector<1x10x128xf32>,
    %51 = vector.extract_strided_slice %1 {offsets = [4, 0, 0], sizes = [1, 10, 10], strides = [1, 1, 1]} : vector<6x10x10xf32> to vector<1x10x10xf32>
    %52 = vector.shape_cast %51 : vector<1x10x10xf32> to vector<10x10xf32>
    %cst_23 = arith.constant dense<0.000000e+00> : vector<10x128xf32>
    %53 = tpu.matmul %52, %47, %cst_23 {dimension_numbers = #tpu.dot_dimension_numbers<[1], [0], [0], [1], [0, 0, 1, 1], [], []>} : vector<10x10xf32>, vector<10x128xf32>, vector<10x128xf32> -> vector<10x128xf32>
    %54 = vector.extract_strided_slice %2 {offsets = [4, 0, 0], sizes = [1, 10, 1], strides = [1, 1, 1]} : vector<6x10x1xf32> to vector<1x10x1xf32>
    %55 = vector.shape_cast %54 : vector<1x10x1xf32> to vector<10x1xf32>
    %56 = vector.broadcast %55 : vector<10x1xf32> to vector<10x128xf32>
    %57 = arith.addf %53, %56 : vector<10x128xf32>
    %cst_24 = arith.constant 0.000000e+00 : f32
    %58 = vector.broadcast %cst_24 : f32 to vector<10x128xf32>
    %59 = arith.maximumf %57, %58 : vector<10x128xf32>
    %c4 = arith.constant 4 : index
    %c0_25 = arith.constant 0 : index
    %c0_26 = arith.constant 0 : index
    %60 = vector.load %arg4[%c4, %c0_25, %c0_26] : memref<6x10x128xf32, #tpu.memory_space<vmem>>, vector<1x10x128xf32>
    %61 = vector.shape_cast %60 : vector<1x10x128xf32> to vector<10x128xf32>
    %62 = vector.shape_cast %59 : vector<10x128xf32> to vector<1x10x128xf32>
    tpu.vector_store %arg4[%c4, %c0_25, %c0_26], %62 {strides = array<i32>} : memref<6x10x128xf32, #tpu.memory_space<vmem>>, vector<1x10x128xf32>,
    %63 = vector.extract_strided_slice %1 {offsets = [5, 0, 0], sizes = [1, 10, 10], strides = [1, 1, 1]} : vector<6x10x10xf32> to vector<1x10x10xf32>
    %64 = vector.shape_cast %63 : vector<1x10x10xf32> to vector<10x10xf32>
    %cst_27 = arith.constant dense<0.000000e+00> : vector<10x128xf32>
    %65 = tpu.matmul %64, %59, %cst_27 {dimension_numbers = #tpu.dot_dimension_numbers<[1], [0], [0], [1], [0, 0, 1, 1], [], []>} : vector<10x10xf32>, vector<10x128xf32>, vector<10x128xf32> -> vector<10x128xf32>
    %66 = vector.extract_strided_slice %2 {offsets = [5, 0, 0], sizes = [1, 10, 1], strides = [1, 1, 1]} : vector<6x10x1xf32> to vector<1x10x1xf32>
    %67 = vector.shape_cast %66 : vector<1x10x1xf32> to vector<10x1xf32>
    %68 = vector.broadcast %67 : vector<10x1xf32> to vector<10x128xf32>
    %69 = arith.addf %65, %68 : vector<10x128xf32>
    %cst_28 = arith.constant 0.000000e+00 : f32
    %70 = vector.broadcast %cst_28 : f32 to vector<10x128xf32>
    %71 = arith.maximumf %69, %70 : vector<10x128xf32>
    %c5 = arith.constant 5 : index
    %c0_29 = arith.constant 0 : index
    %c0_30 = arith.constant 0 : index
    %72 = vector.load %arg4[%c5, %c0_29, %c0_30] : memref<6x10x128xf32, #tpu.memory_space<vmem>>, vector<1x10x128xf32>
    %73 = vector.shape_cast %72 : vector<1x10x128xf32> to vector<10x128xf32>
    %74 = vector.shape_cast %71 : vector<10x128xf32> to vector<1x10x128xf32>
    tpu.vector_store %arg4[%c5, %c0_29, %c0_30], %74 {strides = array<i32>} : memref<6x10x128xf32, #tpu.memory_space<vmem>>, vector<1x10x128xf32>,
    return
  }
  func.func @transform_0(%arg0: i32) -> (i32, i32) {
    %c0_i32 = arith.constant 0 : i32
    %c0_i32_0 = arith.constant 0 : i32
    return %c0_i32, %arg0 : i32, i32
  }
  func.func @transform_1(%arg0: i32) -> (i32, i32, i32) {
    %c0_i32 = arith.constant 0 : i32
    %c0_i32_0 = arith.constant 0 : i32
    %c0_i32_1 = arith.constant 0 : i32
    %c0_i32_2 = arith.constant 0 : i32
    return %c0_i32, %c0_i32_0, %c0_i32_1 : i32, i32, i32
  }
  func.func @transform_2(%arg0: i32) -> (i32, i32, i32) {
    %c0_i32 = arith.constant 0 : i32
    %c0_i32_0 = arith.constant 0 : i32
    %c0_i32_1 = arith.constant 0 : i32
    %c0_i32_2 = arith.constant 0 : i32
    return %c0_i32, %c0_i32_0, %c0_i32_1 : i32, i32, i32
  }
  func.func @transform_3(%arg0: i32) -> (i32, i32, i32) {
    %c0_i32 = arith.constant 0 : i32
    %c0_i32_0 = arith.constant 0 : i32
    %c0_i32_1 = arith.constant 0 : i32
    return %c0_i32, %c0_i32_0, %arg0 : i32, i32, i32
  }
}

</mosaic_0001>

<bundles_post_ra>
// kernel: _forward.1
= control target key start
LH: loop header
LB: loop body
LE: loop exit
PB: predicated region body
PF: predicated region fallthrough
CT: control target
= control target key end

     0   :  { %vm57_vm0 = vcmask 1041408   ;;  %vm50_vm1 = vcmask 80896   ;;  %vm773_vm2 = vmmov 1   ;;  %v774_v3 = vmov 0   ;;  %s949_s0 = inlined_call_operand.vmem [shape: f32[10,128], index: 0, kind: input, shape index: {}]   ;;  %s950_s1 = inlined_call_operand.vmem [shape: f32[6,10,10], index: 1, kind: input, shape index: {}]   ;;  %s951_s2 = inlined_call_operand.vmem [shape: f32[6,10,1], index: 2, kind: input, shape index: {}]   ;;  %s952_s3 = inlined_call_operand.vmem [shape: f32[6,10,128], index: 3, kind: output, shape index: {}]  }
   0x1   :  { %v14_v0 = vld [vmem:[%s949_s0] sm:$0xff]  ;;  %v15_v1 = vld [vmem:[%s949_s0 + $0x8] sm:$0x3]  ;;  %vm801_vm3 = vmpackc.low %vm57_vm0, %vm773_vm2  ;;  %771 = vset.pattern.permute.xlu0 %v774_v3  ;;  %772 = vset.pattern.permute.xlu1 %v774_v3 }
   0x2   :  { %v733_v4 = vpack.c.bf16 %v15_v1, %v14_v0  ;;  %v16_v5 = vld [vmem:[%s950_s1] sm:$0xff]  ;;  %v29_v7 = vld [vmem:[%s951_s2 + $0x8] sm:$0x3]  ;;  %v34_v10 = vld [vmem:[%s951_s2 + $0x30] sm:$0xff] }
   0x3   :  { %v28_v6 = vld [vmem:[%s951_s2] sm:$0xff]  ;;  %695 = vmatprep.mubr.msk.f32.mxu0 %vm50_vm1, %v16_v5  ;;  %v17_v8 = vld [vmem:[%s950_s1 + $0x8] sm:$0x3]  ;;  %v38_v12 = vld [vmem:[%s951_s2 + $0x50] sm:$0xff] }
   0x4   :  { %42 = vperm.xlu0 %771, %v28_v6   ;;  %735 = vmatprep.subr.msk.bf16.mxu0 %vm801_vm3, %v733_v4  ;;  %v32_v9 = vld [vmem:[%s951_s2 + $0x20] sm:$0xff]  ;;  %v18_v13 = vld [vmem:[%s950_s1 + $0x10] sm:$0xff]  ;;  %v31_v15 = vld [vmem:[%s951_s2 + $0x18] sm:$0x3] }
   0x5   :  { %738 = vmatpush3.bf16.msk.msra.mxu0 %vm801_vm3, %v733_v4  ;;  %v36_v11 = vld [vmem:[%s951_s2 + $0x40] sm:$0xff]  ;;  %702 = vmatprep.mubr.msk.f32.mxu1 %vm50_vm1, %v18_v13  ;;  %v30_v14 = vld [vmem:[%s951_s2 + $0x10] sm:$0xff]  ;;  %v33_v16 = vld [vmem:[%s951_s2 + $0x28] sm:$0x3] }
   0x6   :  { %142 = vperm.xlu1 %772, %v30_v14   ;;  %v35_v17 = vld [vmem:[%s951_s2 + $0x38] sm:$0x3]  ;;  %v37_v18 = vld [vmem:[%s951_s2 + $0x48] sm:$0x3]  ;;  %v20_v30 = vld [vmem:[%s950_s1 + $0x20] sm:$0xff] }
   0x7   :  { %v39_v19 = vld [vmem:[%s951_s2 + $0x58] sm:$0x3]  ;;  %v21_v40 = vld [vmem:[%s950_s1 + $0x28] sm:$0x3]  ;;  %v22_v41 = vld [vmem:[%s950_s1 + $0x30] sm:$0xff] }
   0x8   :  { %47 = vperm.xlu0 %771, %v29_v7   ;;  %696 = vmatmul.mubr.msk.f32.vlgmr.msra.gmra.mrb[0].mxu0 %vm50_vm1, %v17_v8  ;;  %v19_v29 = vld [vmem:[%s950_s1 + $0x18] sm:$0x3]  ;;  %v24_v52 = vld [vmem:[%s950_s1 + $0x40] sm:$0xff]  ;;  %v25_v62 = vld [vmem:[%s950_s1 + $0x48] sm:$0x3] }
   0x9   :  { %709 = vmatprep.mubr.msk.f32.mxu0 %vm50_vm1, %v20_v30  ;;  %v23_v51 = vld [vmem:[%s950_s1 + $0x38] sm:$0x3]  ;;  %v26_v63 = vld [vmem:[%s950_s1 + $0x50] sm:$0xff] }
   0xa   :  { %147 = vperm.xlu1 %772, %v31_v15  }
   0xc   :  { %241 = vperm.xlu0 %771, %v32_v9  }
   0xe   :  { %246 = vperm.xlu1 %772, %v33_v16  }
  0x10   :  { %340 = vperm.xlu0 %771, %v34_v10   ;;  %v27_v10 = vld [vmem:[%s950_s1 + $0x58] sm:$0x3] }
  0x12   :  { %345 = vperm.xlu1 %772, %v35_v17  }
  0x14   :  { %439 = vperm.xlu0 %771, %v36_v11  }
  0x16   :  { %444 = vperm.xlu1 %772, %v37_v18  }
  0x18   :  { %538 = vperm.xlu0 %771, %v38_v12  }
  0x1a   :  { %543 = vperm.xlu1 %772, %v39_v19  }
  0x83   :  { %v43_v20 = vpop.permute.xlu0 %42 }
  0x85   :  { %v143_v31 = vpop.permute.xlu1 %142 }
  0x87   :  { %v48_v21 = vpop.permute.xlu0 %47 }
  0x89   :  { %v148_v32 = vpop.permute.xlu1 %147 }
  0x8b   :  { %v242_v44 = vpop.permute.xlu0 %241 }
  0x8d   :  { %v247_v42 = vpop.permute.xlu1 %246 }
  0x8f   :  { %v341_v55 = vpop.permute.xlu0 %340 }
  0x91   :  { %v346_v53 = vpop.permute.xlu1 %345 }
  0x93   :  { %v440_v3 = vpop.permute.xlu0 %439 }
  0x95   :  { %v445_v0 = vpop.permute.xlu1 %444 }
  0x97   :  { %v539_v13 = vpop.permute.xlu0 %538 }
  0x99   :  { %v544_v11 = vpop.permute.xlu1 %543 }
  0xdb   :  { %v697_v22 = vpop.f32.mrb[0].mxu0 }
  0xdc   :  { %v133_v23 = vadd.f32 %v697_v22, %v48_v21  ;;  %v127_v24 = vpop.f32.mrb[1].mxu0 }
  0xdd   :  { %v128_v25 = vadd.f32 %v127_v24, %v43_v20 }
  0xde   :  { %v137_v26 = vmax.f32 %v133_v23, 0.0 }
  0xdf   :  { %v136_v27 = vmax.f32 %v128_v25, 0.0 }
  0xe0   :  { %139 = vst [vmem:[%s952_s3 + $0x8] sm:$0x3] %v137_v26 }
  0xe1   :  { %138 = vst [vmem:[%s952_s3] sm:$0xff] %v136_v27  ;;  %v739_v28 = vpack.c.bf16 %v137_v26, %v136_v27 }
  0xe3   :  { %741 = vmatprep.subr.msk.bf16.mxu1 %vm801_vm3, %v739_v28 }
  0xe4   :  { %744 = vmatpush3.bf16.msk.msra.mxu1 %vm801_vm3, %v739_v28 }
  0xe7   :  { %703 = vmatmul.mubr.msk.f32.vlgmr.msra.gmra.mrb[0].mxu1 %vm50_vm1, %v19_v29 }
  0xe8   :  { %716 = vmatprep.mubr.msk.f32.mxu1 %vm50_vm1, %v22_v41 }
 0x1ba   :  { %v704_v33 = vpop.f32.mrb[0].mxu1 }
 0x1bb   :  { %v231_v34 = vadd.f32 %v704_v33, %v148_v32  ;;  %v225_v35 = vpop.f32.mrb[1].mxu1 }
 0x1bc   :  { %v226_v36 = vadd.f32 %v225_v35, %v143_v31 }
 0x1bd   :  { %v235_v37 = vmax.f32 %v231_v34, 0.0 }
 0x1be   :  { %v234_v38 = vmax.f32 %v226_v36, 0.0 }
 0x1bf   :  { %646 = vst [vmem:[%s952_s3 + $0x18] sm:$0x3] %v235_v37 }
 0x1c0   :  { %645 = vst [vmem:[%s952_s3 + $0x10] sm:$0xff] %v234_v38  ;;  %v745_v39 = vpack.c.bf16 %v235_v37, %v234_v38 }
 0x1c2   :  { %747 = vmatprep.subr.msk.bf16.mxu0 %vm801_vm3, %v745_v39 }
 0x1c3   :  { %750 = vmatpush3.bf16.msk.msra.mxu0 %vm801_vm3, %v745_v39 }
 0x1c6   :  { %710 = vmatmul.mubr.msk.f32.vlgmr.msra.gmra.mrb[2].mxu0 %vm50_vm1, %v21_v40 }
 0x1c7   :  { %723 = vmatprep.mubr.msk.f32.mxu0 %vm50_vm1, %v24_v52 }
 0x299   :  { %v711_v43 = vpop.f32.mrb[2].mxu0 }
 0x29a   :  { %v330_v45 = vadd.f32 %v711_v43, %v247_v42  ;;  %v324_v46 = vpop.f32.mrb[3].mxu0 }
 0x29b   :  { %v325_v47 = vadd.f32 %v324_v46, %v242_v44 }
 0x29c   :  { %v334_v48 = vmax.f32 %v330_v45, 0.0 }
 0x29d   :  { %v333_v49 = vmax.f32 %v325_v47, 0.0 }
 0x29e   :  { %651 = vst [vmem:[%s952_s3 + $0x28] sm:$0x3] %v334_v48 }
 0x29f   :  { %650 = vst [vmem:[%s952_s3 + $0x20] sm:$0xff] %v333_v49  ;;  %v751_v50 = vpack.c.bf16 %v334_v48, %v333_v49 }
 0x2a1   :  { %753 = vmatprep.subr.msk.bf16.mxu1 %vm801_vm3, %v751_v50 }
 0x2a2   :  { %756 = vmatpush3.bf16.msk.msra.mxu1 %vm801_vm3, %v751_v50 }
 0x2a5   :  { %717 = vmatmul.mubr.msk.f32.vlgmr.msra.gmra.mrb[2].mxu1 %vm50_vm1, %v23_v51 }
 0x2a6   :  { %730 = vmatprep.mubr.msk.f32.mxu1 %vm50_vm1, %v26_v63 }
 0x378   :  { %v718_v54 = vpop.f32.mrb[2].mxu1 }
 0x379   :  { %v429_v56 = vadd.f32 %v718_v54, %v346_v53  ;;  %v423_v57 = vpop.f32.mrb[3].mxu1 }
 0x37a   :  { %v424_v58 = vadd.f32 %v423_v57, %v341_v55 }
 0x37b   :  { %v433_v59 = vmax.f32 %v429_v56, 0.0 }
 0x37c   :  { %v432_v60 = vmax.f32 %v424_v58, 0.0 }
 0x37d   :  { %656 = vst [vmem:[%s952_s3 + $0x38] sm:$0x3] %v433_v59 }
 0x37e   :  { %655 = vst [vmem:[%s952_s3 + $0x30] sm:$0xff] %v432_v60  ;;  %v757_v61 = vpack.c.bf16 %v433_v59, %v432_v60 }
 0x380   :  { %759 = vmatprep.subr.msk.bf16.mxu0 %vm801_vm3, %v757_v61 }
 0x381   :  { %762 = vmatpush3.bf16.msk.msra.mxu0 %vm801_vm3, %v757_v61 }
 0x384   :  { %724 = vmatmul.mubr.msk.f32.vlgmr.msra.gmra.mrb[4].mxu0 %vm50_vm1, %v25_v62 }
 0x457   :  { %v725_v1 = vpop.f32.mrb[4].mxu0 }
 0x458   :  { %v528_v4 = vadd.f32 %v725_v1, %v445_v0  ;;  %v522_v5 = vpop.f32.mrb[5].mxu0 }
 0x459   :  { %v523_v6 = vadd.f32 %v522_v5, %v440_v3 }
 0x45a   :  { %v532_v7 = vmax.f32 %v528_v4, 0.0 }
 0x45b   :  { %v531_v8 = vmax.f32 %v523_v6, 0.0 }
 0x45c   :  { %661 = vst [vmem:[%s952_s3 + $0x48] sm:$0x3] %v532_v7 }
 0x45d   :  { %660 = vst [vmem:[%s952_s3 + $0x40] sm:$0xff] %v531_v8  ;;  %v763_v9 = vpack.c.bf16 %v532_v7, %v531_v8 }
 0x45f   :  { %765 = vmatprep.subr.msk.bf16.mxu1 %vm801_vm3, %v763_v9 }
 0x460   :  { %768 = vmatpush3.bf16.msk.msra.mxu1 %vm801_vm3, %v763_v9 }
 0x463   :  { %731 = vmatmul.mubr.msk.f32.vlgmr.msra.gmra.mrb[4].mxu1 %vm50_vm1, %v27_v10 }
 0x536   :  { %v732_v12 = vpop.f32.mrb[4].mxu1 }
 0x537   :  { %v627_v14 = vadd.f32 %v732_v12, %v544_v11  ;;  %v621_v15 = vpop.f32.mrb[5].mxu1 }
 0x538   :  { %v622_v16 = vadd.f32 %v621_v15, %v539_v13 }
 0x539   :  { %v631_v17 = vmax.f32 %v627_v14, 0.0 }
 0x53a   :  { %v630_v18 = vmax.f32 %v622_v16, 0.0 }
 0x53b   :  { %666 = vst [vmem:[%s952_s3 + $0x58] sm:$0x3] %v631_v17 }
 0x53c   :  { %665 = vst [vmem:[%s952_s3 + $0x50] sm:$0xff] %v630_v18 }

</bundles_post_ra>
